<compile_context>
chip_gen: v7x
topology: tpu7x:2x2x1
jax: 0.10.0
libtpu: 0.0.40
codegen_flags: <defaults>
</compile_context>

<pallas_src>
import jax
import jax.numpy as jnp
from jax.experimental import pallas as pl
from jax.experimental.pallas import tpu as pltpu


# Explicit VMEM cap (scoped default is only 16 MiB on v5e / 32 MiB on v6e & v7x).
_VMEM_LIMIT = 48 * 1024 * 1024


def _pool_conv_kernel(x_ref, w_ref, y_ref, s_ref, ss_ref):
    """Per batch block:
       x_ref : (Nb, H, Ww, 2*Cin) bf16  NHWC with (even, odd) W columns packed on lanes
       w_ref : (9*Cin, Cout)      bf16  conv taps, (tap, ci)-major  (tap = di*3 + dj)
       y_ref : (Nb, Cout, L)            conv output, channels-major (L = Hh*Ww)
       s_ref, ss_ref : (1, 1, Cout) f32 per-block BN partial sums
    """
    Nb, H, Ww, C2 = x_ref.shape
    Cin = C2 // 2
    Cout = y_ref.shape[1]
    Hh = H // 2
    L = Hh * Ww

    x = x_ref[...]                                            # bf16

    # ---- MaxPool2d(kernel=2, stride=2) -------------------------------------
    # W direction: even/odd columns live in lanes [0:Cin] / [Cin:2*Cin].
    mw = jnp.maximum(x[..., :Cin], x[..., Cin:])              # (Nb, H, Ww, Cin)
    # H direction: split the (leading) H dim and take the pairwise max.
    mh = mw.reshape(Nb, Hh, 2, Ww, Cin)
    pooled = jnp.maximum(mh[:, :, 0], mh[:, :, 1])            # (Nb, Hh, Ww, Cin)

    # ---- replicate padding (W edge then H edge) -----------------------------
    pooled = jnp.concatenate(
        [pooled[:, :, :1], pooled, pooled[:, :, Ww - 1:]], axis=2)   # (Nb, Hh,  Ww+2, Cin)
    pooled = jnp.concatenate(
        [pooled[:, :1], pooled, pooled[:, Hh - 1:]], axis=1)         # (Nb, Hh+2, Ww+2, Cin)

    # ---- im2col + ONE MXU matmul with K = 9*Cin ------------------------------
    taps = []
    for di in range(3):
        for dj in range(3):
            taps.append(pooled[:, di:di + Hh, dj:dj + Ww, :].reshape(Nb * L, Cin))
    im2col = jnp.concatenate(taps, axis=-1)                   # (Nb*L, 9*Cin) bf16

    acc = jnp.dot(im2col, w_ref[...],
                  preferred_element_type=jnp.float32)         # (Nb*L, Cout) f32
    # NOTE: the Conv2d bias is intentionally NOT added — it cancels exactly under
    # training-mode BatchNorm (z - mean(z) is independent of a per-channel constant).

    # ---- BN partial sums (per block; reduced across blocks in the wrapper) ----
    s_ref[0] = jnp.sum(acc, axis=0, keepdims=True)
    ss_ref[0] = jnp.sum(acc * acc, axis=0, keepdims=True)

    # ---- channels-major store: (Nb, Cout, L) is already NCHW-ordered ----------
    if Nb == 1:
        y_ref[...] = acc.T.reshape(1, Cout, L).astype(y_ref.dtype)
    else:
        y_ref[...] = jnp.transpose(acc.reshape(Nb, L, Cout), (0, 2, 1)).astype(y_ref.dtype)


def _bn_relu_kernel(y_ref, scale_ref, shift_ref, o_ref):
    """y_ref: (Rb, L); scale/shift: (Rb, 1) f32 (per-row = per (n, channel));
       o_ref: (Rb, L) f32."""
    y = y_ref[...].astype(jnp.float32)
    o_ref[...] = jnp.maximum(y * scale_ref[...] + shift_ref[...], 0.0).astype(o_ref.dtype)


def _pick_batch_block(n, per_batch_bytes, budget=8 * 2**20):
    """Largest divisor of n fitting the VMEM budget; keep >=2 grid steps when n>=2
    so both TensorCores (v7x megacore) get work."""
    cands = [nb for nb in range(1, n + 1) if n % nb == 0]
    good = [nb for nb in cands
            if nb * per_batch_bytes <= budget and (n // nb >= 2 or n == 1)]
    return max(good) if good else 1


def _pick_rows_block(rows, target=2048):
    """Row block for the BN+ReLU kernel: divisor of `rows`, multiple of 8 (or full),
    <= target, preferring >=2 grid steps."""
    cands = [rb for rb in range(1, rows + 1)
             if rows % rb == 0 and (rb % 8 == 0 or rb == rows)]
    good = [rb for rb in cands if rb <= target and rows // rb >= 2]
    return max(good) if good else rows


def down_block_forward(x_nchw, w_oihw, b, gamma, beta, eps=1e-5):
    # `b` (conv bias) is mathematically a no-op under training-mode BatchNorm and is
    # dropped from the compute (see kernel-1 note).  Kept in the signature for parity.
    del b

    N, Cin, H, W = x_nchw.shape
    Cout = w_oihw.shape[0]
    Hh, Ww = H // 2, W // 2            # MaxPool2d(2) floors odd dims
    L = Hh * Ww

    # Intermediate dtype: bf16 only when the (Cout, L) store stays unmasked
    # (bf16 sublane packing wants Cout % 16 == 0, lane-dense wants L % 128 == 0);
    # otherwise keep f32 (also bit-consistent with the in-kernel BN statistics).
    y_dtype = jnp.bfloat16 if (Cout % 16 == 0 and L % 128 == 0) else jnp.float32

    # NCHW -> NHWC (channels on lanes), crop to even spatial dims, cast to bf16
    # (max-pool is exact in bf16; the cast halves kernel-1 input HBM traffic).
    x_nhwc = jnp.transpose(x_nchw, (0, 2, 3, 1))[:, :2 * Hh, :2 * Ww, :].astype(jnp.bfloat16)
    # Pack (even, odd) W columns onto the lane axis — a FREE row-major reinterpretation.
    x_pairs = x_nhwc.reshape(N, 2 * Hh, Ww, 2 * Cin)

    # OIHW -> (3, 3, Cin, Cout) -> (9*Cin, Cout), bf16 for the MXU.
    w_flat = jnp.transpose(w_oihw, (2, 3, 1, 0)).reshape(9 * Cin, Cout).astype(jnp.bfloat16)

    # Pick how many batch elements to fold into one grid step (matmul M dimension).
    per_batch_bytes = (
        (2 * Hh) * Ww * 2 * Cin * 2 * 3          # bf16 input block (dbl-buffered) + pool temps
        + L * 9 * Cin * 2 * 2                    # im2col + tap copies (bf16)
        + L * Cout * 4 * 2                       # f32 accumulator + transpose copy
        + L * Cout * jnp.dtype(y_dtype).itemsize * 2
    )
    nb = _pick_batch_block(N, per_batch_bytes)
    nblk = N // nb

    y, s, ss = pl.pallas_call(
        _pool_conv_kernel,
        grid=(nblk,),
        in_specs=[
            pl.BlockSpec((nb, 2 * Hh, Ww, 2 * Cin), lambda i: (i, 0, 0, 0)),
            pl.BlockSpec((9 * Cin, Cout), lambda i: (0, 0)),
        ],
        out_specs=[
            pl.BlockSpec((nb, Cout, L), lambda i: (i, 0, 0)),
            pl.BlockSpec((1, 1, Cout), lambda i: (i, 0, 0)),
            pl.BlockSpec((1, 1, Cout), lambda i: (i, 0, 0)),
        ],
        out_shape=[
            jax.ShapeDtypeStruct((N, Cout, L), y_dtype),
            jax.ShapeDtypeStruct((nblk, 1, Cout), jnp.float32),
            jax.ShapeDtypeStruct((nblk, 1, Cout), jnp.float32),
        ],
        compiler_params=pltpu.CompilerParams(
            dimension_semantics=("parallel",),
            vmem_limit_bytes=_VMEM_LIMIT),
    )(x_pairs, w_flat)

    # ---- BatchNorm2d training-mode statistics (batch mean, biased var), f32 ----
    # TODO(synk): single-pass E[x^2]-E[x]^2 can cancel for very-large-mean activations;
    # dropping the conv bias already removes the constant offset, fine at this scale.
    count = jnp.float32(N * L)
    mean = jnp.sum(s[:, 0, :], axis=0) / count
    var = jnp.maximum(jnp.sum(ss[:, 0, :], axis=0) / count - mean * mean, 0.0)
    scale = gamma.astype(jnp.float32) / jnp.sqrt(var + eps)
    shift = beta.astype(jnp.float32) - mean * scale

    # ---- Kernel 2: folded BN affine + ReLU on the flattened (N*Cout, L) layout ----
    rows = N * Cout
    rb = _pick_rows_block(rows)
    y2 = y.reshape(rows, L)                              # free reshape
    scale_rows = jnp.tile(scale, (N,)).reshape(rows, 1)  # per-row (= per (n, channel))
    shift_rows = jnp.tile(shift, (N,)).reshape(rows, 1)

    out = pl.pallas_call(
        _bn_relu_kernel,
        grid=(rows // rb,),
        in_specs=[
            pl.BlockSpec((rb, L), lambda i: (i, 0)),
            pl.BlockSpec((rb, 1), lambda i: (i, 0)),
            pl.BlockSpec((rb, 1), lambda i: (i, 0)),
        ],
        out_specs=pl.BlockSpec((rb, L), lambda i: (i, 0)),
        out_shape=jax.ShapeDtypeStruct((rows, L), jnp.float32),
        compiler_params=pltpu.CompilerParams(
            dimension_semantics=("parallel",),
            vmem_limit_bytes=_VMEM_LIMIT),
    )(y2, scale_rows, shift_rows)

    # (N*Cout, L) row-major == NCHW row-major -> free reshape.
    return out.reshape(N, Cout, Hh, Ww)


def _reference_forward(x, w, b, gamma, beta, eps=1e-5):
    """Pure-JAX reference of the PyTorch DownBlock forward (training mode)."""
    N, C, H, W = x.shape
    xp = x.reshape(N, C, H // 2, 2, W // 2, 2).max(axis=(3, 5))
    xpad = jnp.pad(xp, ((0, 0), (0, 0), (1, 1), (1, 1)), mode="edge")
    y = jax.lax.conv_general_dilated(
        xpad, w, window_strides=(1, 1), padding="VALID",
        dimension_numbers=("NCHW", "OIHW", "NCHW"),
        precision=jax.lax.Precision.HIGHEST)
    y = y + b[None, :, None, None]
    mean = y.mean(axis=(0, 2, 3), keepdims=True)
    var = y.var(axis=(0, 2, 3), keepdims=True)
    y = (y - mean) / jnp.sqrt(var + eps)
    y = y * gamma[None, :, None, None] + beta[None, :, None, None]
    return jnp.maximum(y, 0.0)


if __name__ == "__main__":
    key = jax.random.PRNGKey(0)
    kx, kw, kb, kg, kbt = jax.random.split(key, 5)

    N, Cin, Cout, H, W = 2, 4, 8, 16, 16
    x = jax.random.normal(kx, (N, Cin, H, W), jnp.float32)
    w = 0.1 * jax.random.normal(kw, (Cout, Cin, 3, 3), jnp.float32)   # OIHW
    b = 0.1 * jax.random.normal(kb, (Cout,), jnp.float32)
    gamma = 1.0 + 0.1 * jax.random.normal(kg, (Cout,), jnp.float32)
    beta = 0.1 * jax.random.normal(kbt, (Cout,), jnp.float32)

    out = jax.jit(down_block_forward)(x, w, b, gamma, beta)
    out = jax.block_until_ready(out)

    ref = _reference_forward(x, w, b, gamma, beta)
    assert out.shape == (N, Cout, H // 2, W // 2), out.shape
    # Tolerance covers the bf16 MXU inputs (x, w); everything downstream of the
    # conv accumulator is f32 at these (small-Cout) shapes.
    assert jnp.allclose(out, ref, rtol=2e-2, atol=2e-2), \
        float(jnp.max(jnp.abs(out - ref)))
    print("KERNEL_OK")
</pallas_src>

<mosaic_0001>
module attributes {stable_mosaic.version = 11 : i64} {
  func.func @_pool_conv_kernel(%arg0: i32, %arg1: memref<1x16x8x8xbf16, #tpu.memory_space<vmem>>, %arg2: memref<36x8xbf16, #tpu.memory_space<vmem>>, %arg3: memref<1x8x64xf32, #tpu.memory_space<vmem>>, %arg4: memref<1x1x8xf32, #tpu.memory_space<vmem>>, %arg5: memref<1x1x8xf32, #tpu.memory_space<vmem>>) attributes {dimension_semantics = [#tpu.dimension_semantics<parallel>], iteration_bounds = array<i64: 2>, scalar_prefetch = 0 : i64, scratch_operands = 0 : i64, tpu.core_type = #tpu.core_type<tc>, window_params = [{transform_indices = @transform_0, window_bounds = array<i64: 1, 16, 8, 8>}, {pipeline_mode = #tpu.pipeline_mode<synchronous>, transform_indices = @transform_1, window_bounds = array<i64: 36, 8>}, {transform_indices = @transform_2, window_bounds = array<i64: 1, 8, 64>}, {transform_indices = @transform_3, window_bounds = array<i64: 1, 1, 8>}, {transform_indices = @transform_4, window_bounds = array<i64: 1, 1, 8>}]} {
    %c0 = arith.constant 0 : index
    %c0_0 = arith.constant 0 : index
    %c0_1 = arith.constant 0 : index
    %c0_2 = arith.constant 0 : index
    %0 = vector.load %arg1[%c0, %c0_0, %c0_1, %c0_2] : memref<1x16x8x8xbf16, #tpu.memory_space<vmem>>, vector<1x16x8x8xbf16>
    %1 = vector.extract_strided_slice %0 {offsets = [0, 0, 0, 0], sizes = [1, 16, 8, 4], strides = [1, 1, 1, 1]} : vector<1x16x8x8xbf16> to vector<1x16x8x4xbf16>
    %2 = vector.extract_strided_slice %0 {offsets = [0, 0, 0, 4], sizes = [1, 16, 8, 4], strides = [1, 1, 1, 1]} : vector<1x16x8x8xbf16> to vector<1x16x8x4xbf16>
    %3 = arith.maximumf %1, %2 : vector<1x16x8x4xbf16>
    %4 = vector.shape_cast %3 : vector<1x16x8x4xbf16> to vector<1x8x2x8x4xbf16>
    %5 = vector.extract_strided_slice %4 {offsets = [0, 0, 0, 0, 0], sizes = [1, 8, 1, 8, 4], strides = [1, 1, 1, 1, 1]} : vector<1x8x2x8x4xbf16> to vector<1x8x1x8x4xbf16>
    %6 = vector.shape_cast %5 : vector<1x8x1x8x4xbf16> to vector<1x8x8x4xbf16>
    %7 = vector.extract_strided_slice %4 {offsets = [0, 0, 1, 0, 0], sizes = [1, 8, 1, 8, 4], strides = [1, 1, 1, 1, 1]} : vector<1x8x2x8x4xbf16> to vector<1x8x1x8x4xbf16>
    %8 = vector.shape_cast %7 : vector<1x8x1x8x4xbf16> to vector<1x8x8x4xbf16>
    %9 = arith.maximumf %6, %8 : vector<1x8x8x4xbf16>
    %10 = vector.extract_strided_slice %9 {offsets = [0, 0, 0, 0], sizes = [1, 8, 1, 4], strides = [1, 1, 1, 1]} : vector<1x8x8x4xbf16> to vector<1x8x1x4xbf16>
    %11 = vector.extract_strided_slice %9 {offsets = [0, 0, 7, 0], sizes = [1, 8, 1, 4], strides = [1, 1, 1, 1]} : vector<1x8x8x4xbf16> to vector<1x8x1x4xbf16>
    %12 = tpu.concatenate %10, %9, %11 in 2 : vector<1x8x1x4xbf16>, vector<1x8x8x4xbf16>, vector<1x8x1x4xbf16> -> vector<1x8x10x4xbf16>
    %13 = vector.extract_strided_slice %12 {offsets = [0, 0, 0, 0], sizes = [1, 1, 10, 4], strides = [1, 1, 1, 1]} : vector<1x8x10x4xbf16> to vector<1x1x10x4xbf16>
    %14 = vector.extract_strided_slice %12 {offsets = [0, 7, 0, 0], sizes = [1, 1, 10, 4], strides = [1, 1, 1, 1]} : vector<1x8x10x4xbf16> to vector<1x1x10x4xbf16>
    %15 = tpu.concatenate %13, %12, %14 in 1 : vector<1x1x10x4xbf16>, vector<1x8x10x4xbf16>, vector<1x1x10x4xbf16> -> vector<1x10x10x4xbf16>
    %16 = vector.extract_strided_slice %15 {offsets = [0, 0, 0, 0], sizes = [1, 8, 8, 4], strides = [1, 1, 1, 1]} : vector<1x10x10x4xbf16> to vector<1x8x8x4xbf16>
    %17 = vector.shape_cast %16 : vector<1x8x8x4xbf16> to vector<64x4xbf16>
    %18 = vector.extract_strided_slice %15 {offsets = [0, 0, 1, 0], sizes = [1, 8, 8, 4], strides = [1, 1, 1, 1]} : vector<1x10x10x4xbf16> to vector<1x8x8x4xbf16>
    %19 = vector.shape_cast %18 : vector<1x8x8x4xbf16> to vector<64x4xbf16>
    %20 = vector.extract_strided_slice %15 {offsets = [0, 0, 2, 0], sizes = [1, 8, 8, 4], strides = [1, 1, 1, 1]} : vector<1x10x10x4xbf16> to vector<1x8x8x4xbf16>
    %21 = vector.shape_cast %20 : vector<1x8x8x4xbf16> to vector<64x4xbf16>
    %22 = vector.extract_strided_slice %15 {offsets = [0, 1, 0, 0], sizes = [1, 8, 8, 4], strides = [1, 1, 1, 1]} : vector<1x10x10x4xbf16> to vector<1x8x8x4xbf16>
    %23 = vector.shape_cast %22 : vector<1x8x8x4xbf16> to vector<64x4xbf16>
    %24 = vector.extract_strided_slice %15 {offsets = [0, 1, 1, 0], sizes = [1, 8, 8, 4], strides = [1, 1, 1, 1]} : vector<1x10x10x4xbf16> to vector<1x8x8x4xbf16>
    %25 = vector.shape_cast %24 : vector<1x8x8x4xbf16> to vector<64x4xbf16>
    %26 = vector.extract_strided_slice %15 {offsets = [0, 1, 2, 0], sizes = [1, 8, 8, 4], strides = [1, 1, 1, 1]} : vector<1x10x10x4xbf16> to vector<1x8x8x4xbf16>
    %27 = vector.shape_cast %26 : vector<1x8x8x4xbf16> to vector<64x4xbf16>
    %28 = vector.extract_strided_slice %15 {offsets = [0, 2, 0, 0], sizes = [1, 8, 8, 4], strides = [1, 1, 1, 1]} : vector<1x10x10x4xbf16> to vector<1x8x8x4xbf16>
    %29 = vector.shape_cast %28 : vector<1x8x8x4xbf16> to vector<64x4xbf16>
    %30 = vector.extract_strided_slice %15 {offsets = [0, 2, 1, 0], sizes = [1, 8, 8, 4], strides = [1, 1, 1, 1]} : vector<1x10x10x4xbf16> to vector<1x8x8x4xbf16>
    %31 = vector.shape_cast %30 : vector<1x8x8x4xbf16> to vector<64x4xbf16>
    %32 = vector.extract_strided_slice %15 {offsets = [0, 2, 2, 0], sizes = [1, 8, 8, 4], strides = [1, 1, 1, 1]} : vector<1x10x10x4xbf16> to vector<1x8x8x4xbf16>
    %33 = vector.shape_cast %32 : vector<1x8x8x4xbf16> to vector<64x4xbf16>
    %34 = tpu.concatenate %17, %19, %21, %23, %25, %27, %29, %31, %33 in 1 : vector<64x4xbf16>, vector<64x4xbf16>, vector<64x4xbf16>, vector<64x4xbf16>, vector<64x4xbf16>, vector<64x4xbf16>, vector<64x4xbf16>, vector<64x4xbf16>, vector<64x4xbf16> -> vector<64x36xbf16>
    %c0_3 = arith.constant 0 : index
    %c0_4 = arith.constant 0 : index
    %35 = vector.load %arg2[%c0_3, %c0_4] : memref<36x8xbf16, #tpu.memory_space<vmem>>, vector<36x8xbf16>
    %cst = arith.constant dense<0.000000e+00> : vector<64x8xf32>
    %36 = tpu.matmul %34, %35, %cst {dimension_numbers = #tpu.dot_dimension_numbers<[1], [0], [0], [1], [0, 0, 1, 1], [], []>} : vector<64x36xbf16>, vector<36x8xbf16>, vector<64x8xf32> -> vector<64x8xf32>
    %cst_5 = arith.constant dense<0.000000e+00> : vector<8xf32>
    %37 = vector.multi_reduction <add>, %36, %cst_5 [0] : vector<64x8xf32> to vector<8xf32>
    %38 = vector.shape_cast %37 : vector<8xf32> to vector<1x8xf32>
    %c0_6 = arith.constant 0 : index
    %c0_7 = arith.constant 0 : index
    %c0_8 = arith.constant 0 : index
    %39 = vector.load %arg4[%c0_6, %c0_7, %c0_8] : memref<1x1x8xf32, #tpu.memory_space<vmem>>, vector<1x1x8xf32>
    %40 = vector.shape_cast %39 : vector<1x1x8xf32> to vector<1x8xf32>
    %41 = vector.shape_cast %38 : vector<1x8xf32> to vector<1x1x8xf32>
    tpu.vector_store %arg4[%c0_6, %c0_7, %c0_8], %41 {strides = array<i32>} : memref<1x1x8xf32, #tpu.memory_space<vmem>>, vector<1x1x8xf32>,
    %42 = arith.mulf %36, %36 : vector<64x8xf32>
    %cst_9 = arith.constant dense<0.000000e+00> : vector<8xf32>
    %43 = vector.multi_reduction <add>, %42, %cst_9 [0] : vector<64x8xf32> to vector<8xf32>
    %44 = vector.shape_cast %43 : vector<8xf32> to vector<1x8xf32>
    %c0_10 = arith.constant 0 : index
    %c0_11 = arith.constant 0 : index
    %c0_12 = arith.constant 0 : index
    %45 = vector.load %arg5[%c0_10, %c0_11, %c0_12] : memref<1x1x8xf32, #tpu.memory_space<vmem>>, vector<1x1x8xf32>
    %46 = vector.shape_cast %45 : vector<1x1x8xf32> to vector<1x8xf32>
    %47 = vector.shape_cast %44 : vector<1x8xf32> to vector<1x1x8xf32>
    tpu.vector_store %arg5[%c0_10, %c0_11, %c0_12], %47 {strides = array<i32>} : memref<1x1x8xf32, #tpu.memory_space<vmem>>, vector<1x1x8xf32>,
    %48 = tpu.transpose %36, [1, 0] : vector<64x8xf32> -> vector<8x64xf32>
    %49 = vector.shape_cast %48 : vector<8x64xf32> to vector<1x8x64xf32>
    %c0_13 = arith.constant 0 : index
    %c0_14 = arith.constant 0 : index
    %c0_15 = arith.constant 0 : index
    %50 = vector.load %arg3[%c0_13, %c0_14, %c0_15] : memref<1x8x64xf32, #tpu.memory_space<vmem>>, vector<1x8x64xf32>
    tpu.vector_store %arg3[%c0_13, %c0_14, %c0_15], %49 {strides = array<i32>} : memref<1x8x64xf32, #tpu.memory_space<vmem>>, vector<1x8x64xf32>,
    return
  }
  func.func @transform_0(%arg0: i32) -> (i32, i32, i32, i32) {
    %c0_i32 = arith.constant 0 : i32
    %c0_i32_0 = arith.constant 0 : i32
    %c0_i32_1 = arith.constant 0 : i32
    %c0_i32_2 = arith.constant 0 : i32
    return %arg0, %c0_i32, %c0_i32_0, %c0_i32_1 : i32, i32, i32, i32
  }
  func.func @transform_1(%arg0: i32) -> (i32, i32) {
    %c0_i32 = arith.constant 0 : i32
    %c0_i32_0 = arith.constant 0 : i32
    %c0_i32_1 = arith.constant 0 : i32
    return %c0_i32, %c0_i32_0 : i32, i32
  }
  func.func @transform_2(%arg0: i32) -> (i32, i32, i32) {
    %c0_i32 = arith.constant 0 : i32
    %c0_i32_0 = arith.constant 0 : i32
    %c0_i32_1 = arith.constant 0 : i32
    return %arg0, %c0_i32, %c0_i32_0 : i32, i32, i32
  }
  func.func @transform_3(%arg0: i32) -> (i32, i32, i32) {
    %c0_i32 = arith.constant 0 : i32
    %c0_i32_0 = arith.constant 0 : i32
    %c0_i32_1 = arith.constant 0 : i32
    return %arg0, %c0_i32, %c0_i32_0 : i32, i32, i32
  }
  func.func @transform_4(%arg0: i32) -> (i32, i32, i32) {
    %c0_i32 = arith.constant 0 : i32
    %c0_i32_0 = arith.constant 0 : i32
    %c0_i32_1 = arith.constant 0 : i32
    return %arg0, %c0_i32, %c0_i32_0 : i32, i32, i32
  }
}

module attributes {stable_mosaic.version = 11 : i64} {
  func.func @_bn_relu_kernel(%arg0: i32, %arg1: memref<8x64xf32, #tpu.memory_space<vmem>>, %arg2: memref<8x1xf32, #tpu.memory_space<vmem>>, %arg3: memref<8x1xf32, #tpu.memory_space<vmem>>, %arg4: memref<8x64xf32, #tpu.memory_space<vmem>>) attributes {dimension_semantics = [#tpu.dimension_semantics<parallel>], iteration_bounds = array<i64: 2>, scalar_prefetch = 0 : i64, scratch_operands = 0 : i64, tpu.core_type = #tpu.core_type<tc>, window_params = [{transform_indices = @transform_0, window_bounds = array<i64: 8, 64>}, {transform_indices = @transform_1, window_bounds = array<i64: 8, 1>}, {transform_indices = @transform_2, window_bounds = array<i64: 8, 1>}, {transform_indices = @transform_3, window_bounds = array<i64: 8, 64>}]} {
    %c0 = arith.constant 0 : index
    %c0_0 = arith.constant 0 : index
    %0 = vector.load %arg1[%c0, %c0_0] : memref<8x64xf32, #tpu.memory_space<vmem>>, vector<8x64xf32>
    %c0_1 = arith.constant 0 : index
    %c0_2 = arith.constant 0 : index
    %1 = vector.load %arg2[%c0_1, %c0_2] : memref<8x1xf32, #tpu.memory_space<vmem>>, vector<8x1xf32>
    %2 = vector.broadcast %1 : vector<8x1xf32> to vector<8x64xf32>
    %3 = arith.mulf %0, %2 : vector<8x64xf32>
    %c0_3 = arith.constant 0 : index
    %c0_4 = arith.constant 0 : index
    %4 = vector.load %arg3[%c0_3, %c0_4] : memref<8x1xf32, #tpu.memory_space<vmem>>, vector<8x1xf32>
    %5 = vector.broadcast %4 : vector<8x1xf32> to vector<8x64xf32>
    %6 = arith.addf %3, %5 : vector<8x64xf32>
    %cst = arith.constant 0.000000e+00 : f32
    %7 = vector.broadcast %cst : f32 to vector<8x64xf32>
    %8 = arith.maximumf %6, %7 : vector<8x64xf32>
    %c0_5 = arith.constant 0 : index
    %c0_6 = arith.constant 0 : index
    %9 = vector.load %arg4[%c0_5, %c0_6] : memref<8x64xf32, #tpu.memory_space<vmem>>, vector<8x64xf32>
    tpu.vector_store %arg4[%c0_5, %c0_6], %8 {strides = array<i32>} : memref<8x64xf32, #tpu.memory_space<vmem>>, vector<8x64xf32>,
    return
  }
  func.func @transform_0(%arg0: i32) -> (i32, i32) {
    %c0_i32 = arith.constant 0 : i32
    %c0_i32_0 = arith.constant 0 : i32
    return %arg0, %c0_i32 : i32, i32
  }
  func.func @transform_1(%arg0: i32) -> (i32, i32) {
    %c0_i32 = arith.constant 0 : i32
    %c0_i32_0 = arith.constant 0 : i32
    return %arg0, %c0_i32 : i32, i32
  }
  func.func @transform_2(%arg0: i32) -> (i32, i32) {
    %c0_i32 = arith.constant 0 : i32
    %c0_i32_0 = arith.constant 0 : i32
    return %arg0, %c0_i32 : i32, i32
  }
  func.func @transform_3(%arg0: i32) -> (i32, i32) {
    %c0_i32 = arith.constant 0 : i32
    %c0_i32_0 = arith.constant 0 : i32
    return %arg0, %c0_i32 : i32, i32
  }
}

</mosaic_0001>

<bundles_post_ra>
// kernel: tile.13
= control target key start
LH: loop header
LB: loop body
LE: loop exit
PB: predicated region body
PF: predicated region fallthrough
CT: control target
= control target key end

     0   :  { %s22_s0 = inlined_call_operand.vmem [shape: f32[8], index: 0, kind: input, shape index: {}]   ;;  %s23_s1 = inlined_call_operand.vmem [shape: f32[2,8], index: 1, kind: output, shape index: {}]  }
   0x1   :  { %v4_v0 = vld [vmem:[%s22_s0] ss:$0 sm:$0xff] }
   0x2   :  { %5 = vst [vmem:[%s23_s1] sm:$0x3] %v4_v0 }

// kernel: tile.0
= control target key start
LH: loop header
LB: loop body
LE: loop exit
PB: predicated region body
PF: predicated region fallthrough
CT: control target
= control target key end

     0   :  { %s66_s8 = smov 125   ;;  %vm7_vm0 = vcmask 7168   ;;  %s67_s11 = smov 126   ;;  %s117_s0 = inlined_call_operand.vmem [shape: f32[2,8], index: 0, kind: input, shape index: {}]   ;;  %s118_s1 = inlined_call_operand.vmem [shape: f32[16,1], index: 1, kind: output, shape index: {}]  }
   0x1   :  { %v4_v0 = vld [vmem:[%s117_s0] sm:$0x3]  ;;  %s65_s0 = smov 127   ;;  %s68_s12 = smov 124  }
   0x2   :  { %5 = vst [vmem:[#allocation0] sm:$0x3] %v4_v0  ;;  %s69_s13 = smov 123   ;;  %s70_s14 = smov 122  }
   0x3   :  { %s71_s15 = smov 121  }
   0x9   :  { %v9_v1 = vld [vmem:[#allocation0] sm:$0x3]  }
   0xa   :  { %v21_v2 = vld [vmem:[#allocation0] sm:$0x3]   ;;  %10 = vrot.lane.b32.xlu0 %v9_v1, %s65_s0 }
   0xb   :  { %22 = vrot.lane.b32.xlu1 %v21_v2, %s66_s8  ;;  %v15_v3 = vld [vmem:[#allocation0] sm:$0x3]  }
   0xc   :  { %v27_v4 = vld [vmem:[#allocation0] sm:$0x3]  }
   0xd   :  { %v6_v5 = vld [vmem:[#allocation0] sm:$0x3]  }
   0xe   :  { %8 = vst.msk [vmem:[%s118_s1] ss:$8 sm:$0x3] %vm7_vm0, %v6_v5   ;;  %16 = vrot.lane.b32.xlu0 %v15_v3, %s67_s11  ;;  %v33_v6 = vld [vmem:[#allocation0] sm:$0x3]  }
   0xf   :  { %28 = vrot.lane.b32.xlu1 %v27_v4, %s68_s12  ;;  %v39_v7 = vld [vmem:[#allocation0] sm:$0x3]  }
  0x10   :  { %v45_v8 = vld [vmem:[#allocation0] sm:$0x3]  }
  0x12   :  { %34 = vrot.lane.b32.xlu0 %v33_v6, %s69_s13 }
  0x13   :  { %40 = vrot.lane.b32.xlu1 %v39_v7, %s70_s14 }
  0x16   :  { %46 = vrot.lane.b32.xlu0 %v45_v8, %s71_s15 }
  0x7c   :  { %v11_v9 = vpop.permute.xlu0 %10  }
  0x7d   :  { %v23_v10 = vpop.permute.xlu1 %22   ;;  %51 = vst.msk [vmem:[%s118_s1 + $0x1] ss:$8 sm:$0x3] %vm7_vm0, %v11_v9  }
  0x7e   :  { %53 = vst.msk [vmem:[%s118_s1 + $0x3] ss:$8 sm:$0x3] %vm7_vm0, %v23_v10  }
  0x80   :  { %v17_v11 = vpop.permute.xlu0 %16  }
  0x81   :  { %v29_v12 = vpop.permute.xlu1 %28   ;;  %52 = vst.msk [vmem:[%s118_s1 + $0x2] ss:$8 sm:$0x3] %vm7_vm0, %v17_v11  }
  0x82   :  { %54 = vst.msk [vmem:[%s118_s1 + $0x4] ss:$8 sm:$0x3] %vm7_vm0, %v29_v12  }
  0x84   :  { %v35_v13 = vpop.permute.xlu0 %34  }
  0x85   :  { %v41_v14 = vpop.permute.xlu1 %40   ;;  %55 = vst.msk [vmem:[%s118_s1 + $0x5] ss:$8 sm:$0x3] %vm7_vm0, %v35_v13  }
  0x86   :  { %56 = vst.msk [vmem:[%s118_s1 + $0x6] ss:$8 sm:$0x3] %vm7_vm0, %v41_v14  }
  0x88   :  { %v47_v15 = vpop.permute.xlu0 %46  }
  0x89   :  { %57 = vst.msk [vmem:[%s118_s1 + $0x7] ss:$8 sm:$0x3] %vm7_vm0, %v47_v15  }

// kernel: down_block_forward.3
= control target key start
LH: loop header
LB: loop body
LE: loop exit
PB: predicated region body
PF: predicated region fallthrough
CT: control target
= control target key end

     0   :  { %s345_s12 = smov 0   ;;  %s368_s0 = inlined_call_operand.vmem [shape: f32[16,64], index: 0, kind: input, shape index: {}]   ;;  %s369_s1 = inlined_call_operand.vmem [shape: f32[16,1], index: 1, kind: input, shape index: {}]   ;;  %s370_s2 = inlined_call_operand.vmem [shape: f32[16,1], index: 2, kind: input, shape index: {}]   ;;  %s371_s3 = inlined_call_operand.vmem [shape: f32[16,64], index: 3, kind: output, shape index: {}]  }
   0x1 LB: > { %s295_s13 = sadd.s32 4294967295, %s322_s12   ;;  %p299_p0 = scmp.ge.s32.totalorder %s322_s12, 1  ;;  %s322_s12 = sphi %s345_s12, %s13_s12  }
   0x2   : > { %p154_p1 = scmp.lt.s32.totalorder %s322_s12, 3 }
   0x4   : > { %p155_p2 = pnand %p299_p0, %p154_p1 }
   0x5   : > { %p184_p3 = scmp.lt.s32.totalorder (!%p155_p2), %s295_s13, 1  ;;  %v324_v0 = vmov (!%p155_p2), 0   ;;  %vm216_vm0 = vcmask (!%p155_p2), 523264  }
   0x6   : > { %158 = sbr.rel (%p155_p2) target bundleno = 154 (0x9a), region = 32  ;;  %315 = vset.pattern.permute.xlu0 (!%p155_p2), %v324_v0 }
   0xd   : > { %s373_s13 = smov (!%p184_p3, %s295_s13), 1 }
   0xe   : > { %s300_s14 = sshll.u32 %s373_s13, 3 }
   0xf   : > { %s191_s17 = scalar_lea.vmem %s369_s1, %s300_s14  ;;  %s195_s20 = scalar_lea.vmem %s370_s2, %s300_s14 }
  0x10   : > { %v201_v1 = vld [vmem:[%s191_s17] sm:$0xff]  ;;  %s187_s23 = scalar_lea.vmem %s368_s0, %s300_s14  ;;  %s199_s26 = scalar_lea.vmem %s371_s3, %s300_s14 }
  0x11   : > { %204 = vperm.xlu0 %315, %v201_v1   ;;  %v208_v2 = vld [vmem:[%s195_s20] sm:$0xff] }
  0x12   : > { %v200_v4 = vld [vmem:[%s187_s23] sm:$0xff] }
  0x15   : > { %211 = vperm.xlu0 %315, %v208_v2  }
  0x90   : > { %v205_v3 = vpop.permute.xlu0 %204 }
  0x91   : > { %v207_v5 = vmul.f32 %v205_v3, %v200_v4 }
  0x94   : > { %v212_v6 = vpop.permute.xlu0 %211 }
  0x95   : > { %v214_v7 = vadd.f32 %v212_v6, %v207_v5 }
  0x97   : > { %v215_v8 = vmax.f32 %v214_v7, 0.0 }
  0x99   : > { %217 = vst.msk [vmem:[%s199_s26] sm:$0xff] %vm216_vm0, %v215_v8 }
  0x9a PF: > { %s13_s12 = sadd.s32 1, %s322_s12  }
  0x9b   : > { %p10_p4 = scmp.ge.s32.totalorder %s13_s12, 4  }
  0x9d   :  { %12 = sbr.rel (!%p10_p4) target bundleno = 1 (0x1), region = 68 }

// kernel: down_block_forward.2
= control target key start
LH: loop header
LB: loop body
LE: loop exit
PB: predicated region body
PF: predicated region fallthrough
CT: control target
= control target key end

     0   :  { %s1269_s15 = smov 0   ;;  %s1634_s0 = inlined_call_operand.vmem [shape: bf16[2,16,8,8], index: 0, kind: input, shape index: {}]   ;;  %s1635_s1 = inlined_call_operand.vmem [shape: bf16[36,8], index: 1, kind: input, shape index: {}]   ;;  %s1636_s2 = inlined_call_operand.vmem [shape: f32[2,8,64], index: 2, kind: output, shape index: {0}]   ;;  %s1637_s3 = inlined_call_operand.vmem [shape: f32[2,1,8], index: 3, kind: output, shape index: {1}]   ;;  %s1638_s4 = inlined_call_operand.vmem [shape: f32[2,1,8], index: 4, kind: output, shape index: {2}]  }
   0x1 LB: > { %s1102_s16 = sadd.s32 4294967295, %s1233_s15   ;;  %p1106_p0 = scmp.ge.s32.totalorder %s1233_s15, 1  ;;  %s1233_s15 = sphi %s1269_s15, %s15_s15  }
   0x2   : > { %p167_p1 = scmp.lt.s32.totalorder %s1233_s15, 3 }
   0x4   : > { %p168_p2 = pnand %p1106_p0, %p167_p1 }
   0x5   : > { %p198_p3 = scmp.lt.s32.totalorder (!%p168_p2), %s1102_s16, 1  ;;  %s1235_s21 = smov (!%p168_p2), 124   ;;  %vm422_vm0 = vcmask (!%p168_p2), 1040384   ;;  %vm423_vm1 = vsmask.f32 (!%p168_p2), 256  ;;  %vm433_vm2 = vcmask (!%p168_p2), 1044480  }
   0x6   : > { %171 = sbr.rel (%p168_p2) target bundleno = 671 (0x29f), region = 28  ;;  %vm434_vm3 = vsmask.f32 (!%p168_p2), 4352  ;;  %vm1326_vm4 = vmand (!%p168_p2), %vm422_vm0, %vm423_vm1  ;;  %s1236_s22 = smov (!%p168_p2), 12   ;;  %vm580_vm6 = vcmask (!%p168_p2), 1042432   ;;  %vm581_vm7 = vcmask (!%p168_p2), 1046532  }
   0x7   : > { %vm1331_vm5 = vmand (!%p168_p2), %vm433_vm2, %vm434_vm3  ;;  %s1237_s23 = smov (!%p168_p2), 24   ;;  %s1238_s24 = smov (!%p168_p2), 8   ;;  %vm479_vm9 = vsmask.f32 (!%p168_p2), 3328  ;;  %vm480_vm10 = vsmask.f32 (!%p168_p2), 7440 }
   0x8   : > { %vm1400_vm8 = vmor (!%p168_p2), %vm580_vm6, %vm581_vm7  ;;  %s1239_s25 = smov (!%p168_p2), 20   ;;  %s1240_s28 = smov (!%p168_p2), 32   ;;  %vm843_vm12 = vcmask (!%p168_p2), 1041408   ;;  %vm739_vm13 = vcmask (!%p168_p2), 31744   ;;  %vm751_vm14 = vcmask (!%p168_p2), 64512   ;;  %vm760_vm15 = vcmask (!%p168_p2), 97280  }
   0x9   : > { %vm1510_vm11 = vmor (!%p168_p2), %vm479_vm9, %vm480_vm10  ;;  %s1241_s7 = smov (!%p168_p2), 4   ;;  %s1242_s8 = smov (!%p168_p2), 16   ;;  %vm769_vm0 = vcmask (!%p168_p2), 130048   ;;  %vm778_vm1 = vcmask (!%p168_p2), 162816   ;;  %vm787_vm2 = vcmask (!%p168_p2), 195584   ;;  %vm796_vm3 = vcmask (!%p168_p2), 228352  }
   0xa   : > { %s1243_s9 = smov (!%p168_p2), 28   ;;  %vm933_vm6 = vcmask (!%p168_p2), 57344   ;;  %vm997_vm7 = vcmask (!%p168_p2), 523264  }
   0xd   : > { %s1648_s16 = smov (!%p198_p3, %s1102_s16), 1 }
   0xe   : > { %s1176_s17 = sshll.u32 %s1648_s16, 6  ;;  %s209_s12 = scalar_lea.vmem %s1637_s3, %s1648_s16 }
   0xf   : > { %s1283_s20 = scalar_lea.vmem %s1634_s0, %s1176_s17  ;;  %s212_s17 = scalar_lea.vmem %s1638_s4, %s1648_s16 }
  0x10   : > { %v216_v0 = vld [vmem:[%s1283_s20 + $0x8] sm:$0xf]  ;;  %v214_v1 = vld [vmem:[%s1283_s20] sm:$0xf]  ;;  %v217_v2 = vld [vmem:[%s1283_s20 + $0xc] sm:$0xf] }
  0x11   : > { %250 = vrot.lane.b32.xlu1 %v216_v0, %s1235_s21  ;;  %246 = vrot.lane.b32.xlu0 %v214_v1, %s1235_s21  ;;  %v215_v3 = vld [vmem:[%s1283_s20 + $0x4] sm:$0xf]  ;;  %v219_v4 = vld [vmem:[%s1283_s20 + $0x14] sm:$0xf]  ;;  %s1109_s18 = sshll.u32 %s1648_s16, 3 }
  0x12   : > { %v218_v5 = vld [vmem:[%s1283_s20 + $0x10] sm:$0xf]  ;;  %v221_v6 = vld [vmem:[%s1283_s20 + $0x1c] sm:$0xf]  ;;  %v220_v7 = vld [vmem:[%s1283_s20 + $0x18] sm:$0xf] }
  0x13   : > { %v1294_v8 = vld [vmem:[%s1283_s20 + $0x24] sm:$0xf]  ;;  %v1297_v9 = vld [vmem:[%s1283_s20 + $0x20] sm:$0xf]  ;;  %v1302_v10 = vld [vmem:[%s1283_s20 + $0x2c] sm:$0xf] }
  0x14   : > { %v1305_v11 = vld [vmem:[%s1283_s20 + $0x28] sm:$0xf]  ;;  %v1310_v12 = vld [vmem:[%s1283_s20 + $0x34] sm:$0xf]  ;;  %v1313_v13 = vld [vmem:[%s1283_s20 + $0x30] sm:$0xf] }
  0x15   : > { %252 = vrot.lane.b32.xlu1 %v217_v2, %s1235_s21  ;;  %248 = vrot.lane.b32.xlu0 %v215_v3, %s1235_s21  ;;  %v1318_v14 = vld [vmem:[%s1283_s20 + $0x3c] sm:$0xf]  ;;  %v1321_v15 = vld [vmem:[%s1283_s20 + $0x38] sm:$0xf] }
  0x19   : > { %256 = vrot.lane.b32.xlu1 %v219_v4, %s1235_s21  ;;  %254 = vrot.lane.b32.xlu0 %v218_v5, %s1235_s21 }
  0x1d   : > { %260 = vrot.lane.b32.xlu1 %v221_v6, %s1235_s21  ;;  %258 = vrot.lane.b32.xlu0 %v220_v7, %s1235_s21 }
  0x21   : > { %264 = vrot.lane.b32.xlu1 %v1294_v8, %s1235_s21  ;;  %262 = vrot.lane.b32.xlu0 %v1297_v9, %s1235_s21 }
  0x25   : > { %268 = vrot.lane.b32.xlu1 %v1302_v10, %s1235_s21  ;;  %266 = vrot.lane.b32.xlu0 %v1305_v11, %s1235_s21 }
  0x29   : > { %272 = vrot.lane.b32.xlu1 %v1310_v12, %s1235_s21  ;;  %270 = vrot.lane.b32.xlu0 %v1313_v13, %s1235_s21 }
  0x2d   : > { %276 = vrot.lane.b32.xlu1 %v1318_v14, %s1235_s21  ;;  %274 = vrot.lane.b32.xlu0 %v1321_v15, %s1235_s21  ;;  %s206_s21 = scalar_lea.vmem %s1636_s2, %s1109_s18 }
  0x83   : > { %v251_v16 = vpop.permute.xlu1 %250  ;;  %v247_v17 = vpop.permute.xlu0 %246 }
  0x84   : > { %v296_v20 = vmax.bf16 %v251_v16, %v216_v0  ;;  %v294_v21 = vmax.bf16 %v247_v17, %v214_v1 }
  0x87   : > { %v253_v18 = vpop.permute.xlu1 %252  ;;  %v249_v19 = vpop.permute.xlu0 %248 }
  0x88   : > { %v297_v22 = vmax.bf16 %v253_v18, %v217_v2  ;;  %v295_v23 = vmax.bf16 %v249_v19, %v215_v3 }
  0x8a   : > { %v311_v24 = vmax.bf16 %v297_v22, %v296_v20  ;;  %v310_v25 = vmax.bf16 %v295_v23, %v294_v21 }
  0x8b   : > { %v257_v26 = vpop.permute.xlu1 %256  ;;  %v255_v27 = vpop.permute.xlu0 %254 }
  0x8c   : > { %v1111_v28 = vcombine.low %v311_v24, %v311_v24  ;;  %v1110_v29 = vcombine.low %v310_v25, %v310_v25  ;;  %v299_v30 = vmax.bf16 %v257_v26, %v219_v4  ;;  %v298_v31 = vmax.bf16 %v255_v27, %v218_v5 }
  0x8e   : > { %v350_v32 = vshrl.u32 %v1111_v28, 16  ;;  %v343_v33 = vshrl.u32 %v1110_v29, 16  ;;  %v353_v34 = vshll.u32 %v1111_v28, 16  ;;  %v346_v35 = vshll.u32 %v1110_v29, 16 }
  0x8f   : > { %v312_v36 = vmax.bf16 %v299_v30, %v298_v31  ;;  %v261_v37 = vpop.permute.xlu1 %260  ;;  %v259_v38 = vpop.permute.xlu0 %258  ;;  %v407_v49 = vrot.slane %v1111_v28, 7  ;;  %v406_v50 = vrot.slane %v1110_v29, 7 }
  0x90   : > { %v352_v39 = vrot.slane %v350_v32, 7  ;;  %v345_v40 = vrot.slane %v343_v33, 7  ;;  %v301_v41 = vmax.bf16 %v261_v37, %v221_v6  ;;  %v300_v42 = vmax.bf16 %v259_v38, %v220_v7 }
  0x91   : > { %v1112_v44 = vcombine.low %v312_v36, %v312_v36 }
  0x92   : > { %v355_v45 = vor.u32 %v353_v34, %v352_v39  ;;  %v348_v46 = vor.u32 %v346_v35, %v345_v40  ;;  %v313_v47 = vmax.bf16 %v301_v41, %v300_v42 }
  0x93   : > { %v357_v51 = vshrl.u32 %v1112_v44, 16  ;;  %v360_v52 = vshll.u32 %v1112_v44, 16  ;;  %v265_v53 = vpop.permute.xlu1 %264  ;;  %v263_v54 = vpop.permute.xlu0 %262  ;;  %v408_v1 = vrot.slane %v1112_v44, 7 }
  0x94   : > { %v426_v55 = vsel %vm1326_vm4, %v311_v24, %v355_v45  ;;  %v425_v56 = vsel %vm1326_vm4, %v310_v25, %v348_v46  ;;  %v1113_v57 = vcombine.low %v313_v47, %v313_v47  ;;  %v303_v58 = vmax.bf16 %v265_v53, %v1294_v8 }
  0x95   : > { %v359_v59 = vrot.slane %v357_v51, 7  ;;  %v302_v60 = vmax.bf16 %v263_v54, %v1297_v9  ;;  %v436_v61 = vsel %vm1331_vm5, %v425_v56, %v406_v50  ;;  %v1345_v62 = vsel %vm1331_vm5, %v426_v55, %v407_v49 }
  0x96   : > { %v364_v63 = vshrl.u32 %v1113_v57, 16  ;;  %v1153_v5 = vcombine.low %v436_v61, %v1345_v62  ;;  %v367_v7 = vshll.u32 %v1113_v57, 16  ;;  %v409_v21 = vrot.slane %v1113_v57, 7 }
  0x97   : > { %v362_v0 = vor.u32 %v360_v52, %v359_v59  ;;  %v314_v2 = vmax.bf16 %v303_v58, %v302_v60  ;;  %v269_v3 = vpop.permute.xlu1 %268  ;;  %v267_v4 = vpop.permute.xlu0 %266  ;;  %v1377_v42 = vcombine.low %v436_v61, %v436_v61  ;;  %v1379_v44 = vcombine.high %v436_v61, %v436_v61 }
  0x98   : > { %v366_v6 = vrot.slane %v364_v63, 7  ;;  %v305_v8 = vmax.bf16 %v269_v3, %v1302_v10  ;;  %v304_v9 = vmax.bf16 %v267_v4, %v1305_v11  ;;  %679 = vrot.lane.b32.xlu0 %v1153_v5, %s1236_s22  ;;  %v1395_v57 = vcombine.low %v1345_v62, %v1345_v62 }
  0x99   : > { %v427_v16 = vsel %vm1326_vm4, %v312_v36, %v362_v0  ;;  %v1114_v17 = vcombine.low %v314_v2, %v314_v2  ;;  %v1132_v55 = vrot.slane %v1377_v42, 9  ;;  %v585_v56 = vrot.slane %v1379_v44, 5 }
  0x9a   : > { %v369_v18 = vor.u32 %v367_v7, %v366_v6  ;;  %v315_v19 = vmax.bf16 %v305_v8, %v304_v9  ;;  %v1355_v20 = vsel %vm1331_vm5, %v427_v16, %v408_v1  ;;  %v1406_v61 = vcombine.high %v1345_v62, %v1345_v62 }
  0x9b   : > { %v371_v22 = vshrl.u32 %v1114_v17, 16  ;;  %v273_v23 = vpop.permute.xlu1 %272  ;;  %v271_v24 = vpop.permute.xlu0 %270  ;;  %v1359_v10 = vcombine.low %v1345_v62, %v1355_v20  ;;  %v374_v29 = vshll.u32 %v1114_v17, 16  ;;  %v410_v40 = vrot.slane %v1114_v17, 7 }
  0x9c   : > { %v428_v11 = vsel %vm1326_vm4, %v313_v47, %v369_v18  ;;  %v1115_v25 = vcombine.low %v315_v19, %v315_v19  ;;  %v307_v26 = vmax.bf16 %v273_v23, %v1310_v12  ;;  %v306_v27 = vmax.bf16 %v271_v24, %v1313_v13 }
  0x9d   : > { %v373_v28 = vrot.slane %v371_v22, 7  ;;  %713 = vrot.lane.b32.xlu0 %v1359_v10, %s1237_s23  ;;  %v1369_v30 = vsel %vm1331_vm5, %v428_v11, %v409_v21  ;;  %v586_v6 = vsel %vm1400_vm8, %v1132_v55, %v585_v56  ;;  %v1133_v7 = vrot.slane %v1395_v57, 9 }
  0x9e   : > { %v378_v31 = vshrl.u32 %v1115_v25, 16  ;;  %v316_v32 = vmax.bf16 %v307_v26, %v306_v27  ;;  %v381_v34 = vshll.u32 %v1115_v25, 16  ;;  %v1154_v12 = vcombine.low %v1355_v20, %v1369_v30 }
  0x9f   : > { %v376_v33 = vor.u32 %v374_v29, %v373_v28  ;;  %v277_v35 = vpop.permute.xlu1 %276  ;;  %v275_v36 = vpop.permute.xlu0 %274  ;;  %v411_v47 = vrot.slane %v1115_v25, 7  ;;  %v589_v8 = vrot.slane %v1406_v61, 5  ;;  %v1423_v9 = vcombine.high %v1355_v20, %v1355_v20 }
  0xa0   : > { %v380_v13 = vrot.slane %v378_v31, 7  ;;  %v1116_v37 = vcombine.low %v316_v32, %v316_v32  ;;  %v309_v38 = vmax.bf16 %v277_v35, %v1318_v14  ;;  %v308_v39 = vmax.bf16 %v275_v36, %v1321_v15  ;;  %681 = vrot.lane.b32.xlu1 %v1154_v12, %s1236_s22 }
  0xa1   : > { %v429_v41 = vsel %vm1326_vm4, %v314_v2, %v376_v33  ;;  %v1122_v2 = vcombine.low %v1355_v20, %v1355_v20  ;;  %v1149_v21 = vcombine.low %v586_v6, %v586_v6  ;;  %v590_v20 = vsel %vm1400_vm8, %v1133_v7, %v589_v8 }
  0xa2   : > { %v383_v45 = vor.u32 %v381_v34, %v380_v13  ;;  %v385_v46 = vshrl.u32 %v1116_v37, 16  ;;  %v317_v49 = vmax.bf16 %v309_v38, %v308_v39  ;;  %v440_v14 = vsel %vm1331_vm5, %v429_v41, %v410_v40 }
  0xa3   : > { %v388_v51 = vshll.u32 %v1116_v37, 16  ;;  %v1387_v52 = vcombine.low %v1369_v30, %v440_v14  ;;  %v412_v63 = vrot.slane %v1116_v37, 7  ;;  %v1431_v22 = vcombine.high %v440_v14, %v440_v14 }
  0xa4   : > { %v430_v15 = vsel %vm1326_vm4, %v315_v19, %v383_v45  ;;  %v387_v50 = vrot.slane %v385_v46, 7  ;;  %v1117_v53 = vcombine.low %v317_v49, %v317_v49  ;;  %v1429_v19 = vcombine.low %v440_v14, %v440_v14 }
  0xa5   : > { %v441_v54 = vsel %vm1331_vm5, %v430_v15, %v411_v47  ;;  %715 = vrot.lane.b32.xlu1 %v1387_v52, %s1237_s23  ;;  %v1134_v24 = vrot.slane %v1122_v2, 9  ;;  %v593_v11 = vrot.slane %v1423_v9, 5  ;;  %v1124_v26 = vcombine.low %v1369_v30, %v1369_v30 }
  0xa6   : > { %v390_v58 = vor.u32 %v388_v51, %v387_v50  ;;  %v1155_v59 = vcombine.low %v440_v14, %v441_v54  ;;  %v392_v0 = vshrl.u32 %v1117_v53, 16  ;;  %v395_v4 = vshll.u32 %v1117_v53, 16 }
  0xa7   : > { %v413_v17 = vrot.slane %v1117_v53, 7  ;;  %v1443_v43 = vcombine.high %v1369_v30, %v1369_v30  ;;  %v1161_v48 = vcombine.low %v586_v6, %v590_v20  ;;  %v1136_v27 = vrot.slane %v1429_v19, 9  ;;  %v1224_v53 = vld [vmem:[%s1635_s1] sm:$0xff]  }
  0xa8   : > { %v431_v1 = vsel %vm1326_vm4, %v316_v32, %v390_v58  ;;  %683 = vrot.lane.b32.xlu0 %v1155_v59, %s1236_s22  ;;  %v394_v3 = vrot.slane %v392_v0, 7  ;;  %v601_v28 = vrot.slane %v1431_v22, 5  ;;  %v594_v31 = vsel %vm1400_vm8, %v1134_v24, %v593_v11  ;;  %1184 = vmatprep.subr.bf16.mxu0 %v1224_v53 }
  0xa9   : > { %v442_v5 = vsel %vm1331_vm5, %v431_v1, %v412_v63  ;;  %v483_v32 = vshrl.u32 %v1377_v42, 16  ;;  %v486_v33 = vshll.u32 %v1377_v42, 16  ;;  %v511_v35 = vshrl.u32 %v1122_v2, 16  ;;  %1185 = vmatpush3.bf16.msra.mxu0 %v1224_v53  ;;  %1198 = vmatprep.subr.bf16.mxu1 %v1224_v53 }
  0xaa   : > { %v1417_v62 = vcombine.low %v441_v54, %v442_v5  ;;  %v397_v16 = vor.u32 %v395_v4, %v394_v3  ;;  %v1448_v29 = vcombine.low %v442_v5, %v442_v5  ;;  %v1456_v30 = vcombine.high %v442_v5, %v442_v5  ;;  %1201 = vmatpush3.bf16.msra.mxu1 %v1224_v53 }
  0xab   : > { %v514_v36 = vshll.u32 %v1122_v2, 16  ;;  %v1458_v12 = vcombine.low %v441_v54, %v441_v54  ;;  %v1135_v13 = vrot.slane %v1124_v26, 9  ;;  %v597_v37 = vrot.slane %v1443_v43, 5 }
  0xac   : > { %717 = vrot.lane.b32.xlu0 %v1417_v62, %s1237_s23  ;;  %v432_v18 = vsel %vm1326_vm4, %v317_v49, %v397_v16  ;;  %v1150_v39 = vcombine.low %v590_v20, %v594_v31  ;;  %v1468_v40 = vsel %vm1400_vm8, %v1136_v27, %v601_v28  ;;  %v1470_v41 = vcombine.high %v441_v54, %v441_v54 }
  0xad   : > { %v443_v23 = vsel %vm1331_vm5, %v432_v18, %v413_v17  ;;  %v485_v45 = vrot.slane %v483_v32, 4  ;;  %v488_v46 = vrot.slane %v486_v33, 5  ;;  %v497_v47 = vshrl.u32 %v1395_v57, 16 }
  0xae   : > { %v1156_v25 = vcombine.low %v442_v5, %v443_v23  ;;  %v1454_v34 = vcombine.low %v443_v23, %v443_v23  ;;  %v1462_v38 = vcombine.high %v443_v23, %v443_v23  ;;  %v500_v49 = vshll.u32 %v1395_v57, 16 }
  0xaf   : > { %v1138_v14 = vrot.slane %v1448_v29, 9  ;;  %v609_v15 = vrot.slane %v1456_v30, 5  ;;  %v513_v50 = vrot.slane %v511_v35, 4  ;;  %v516_v51 = vrot.slane %v514_v36, 5 }
  0xb0   : > { %667 = vrot.lane.b32.xlu0 %v1149_v21, %s1238_s24  ;;  %685 = vrot.lane.b32.xlu1 %v1156_v25, %s1236_s22  ;;  %v598_v54 = vsel %vm1400_vm8, %v1135_v13, %v597_v37  ;;  %v525_v55 = vshrl.u32 %v1124_v26, 16  ;;  %v528_v56 = vshll.u32 %v1124_v26, 16  ;;  %v1137_v58 = vrot.slane %v1458_v12, 9  ;;  %v1226_v36 = vld [vmem:[%s1635_s1 + $0x10] ss:$0 sps:$4 sm:$0x33]  }
  0xb1   : > { %v1151_v57 = vcombine.low %v598_v54, %v1468_v40  ;;  %v605_v59 = vrot.slane %v1470_v41, 5  ;;  %v1141_v63 = vrot.slane %v1454_v34, 9  ;;  %v632_v0 = vrot.slane %v1462_v38, 5 }
  0xb2   : > { %v489_v1 = vor.u32 %v488_v46, %v485_v45  ;;  %v499_v2 = vrot.slane %v497_v47, 4  ;;  %v502_v3 = vrot.slane %v500_v49, 5  ;;  %v1162_v4 = vcombine.low %v594_v31, %v598_v54 }
  0xb3   : > { %v610_v5 = vsel %vm1400_vm8, %v1138_v14, %v609_v15  ;;  %v492_v6 = vshll.u32 %v1379_v44, 16  ;;  %v517_v7 = vor.u32 %v516_v51, %v513_v50  ;;  %v527_v8 = vrot.slane %v525_v55, 4  ;;  %v1225_v44 = vld [vmem:[%s1635_s1 + $0x8] sm:$0xff]  }
  0xb4   : > { %705 = vrot.lane.b32.xlu0 %v1161_v48, %s1239_s25  ;;  %719 = vrot.lane.b32.xlu1 %v1454_v34, %s1237_s23  ;;  %v530_v16 = vrot.slane %v528_v56, 5  ;;  %v539_v17 = vshrl.u32 %v1429_v19, 16  ;;  %v542_v18 = vshll.u32 %v1429_v19, 16  ;;  %v606_v21 = vsel %vm1400_vm8, %v1137_v58, %v605_v59 }
  0xb5   : > { %v506_v23 = vshll.u32 %v1406_v61, 16  ;;  %v1503_v20 = vsel %vm1400_vm8, %v1141_v63, %v632_v0  ;;  %v490_v24 = vrot.slane %v489_v1, 4  ;;  %v503_v11 = vor.u32 %v502_v3, %v499_v2  ;;  %1186 = vmatprep.subr.bf16.mxu0 %v1225_v44  ;;  %1199 = vmatprep.subr.bf16.mxu1 %v1225_v44 }
  0xb6   : > { %v520_v25 = vshll.u32 %v1423_v9, 16  ;;  %v1506_v19 = vcombine.low %v606_v21, %v610_v5  ;;  %v494_v61 = vrot.slane %v492_v6, 5  ;;  %v553_v48 = vshrl.u32 %v1458_v12, 16  ;;  %1187 = vmatpush3.bf16.msra.mxu0 %v1225_v44  ;;  %1202 = vmatpush3.bf16.msra.mxu1 %v1225_v44 }
  0xb7   : > { %v556_v27 = vshll.u32 %v1458_v12, 16  ;;  %v518_v60 = vrot.slane %v517_v7, 4  ;;  %v531_v28 = vor.u32 %v530_v16, %v527_v8  ;;  %v541_v9 = vrot.slane %v539_v17, 4  ;;  %1204 = vmatprep.subr.msk.bf16.mxu0 %vm843_vm12, %v1226_v36  ;;  %1205 = vmatprep.subr.msk.bf16.mxu1 %vm843_vm12, %v1226_v36 }
  0xb8   : > { %731 = vrot.lane.b32.xlu0 %v1150_v39, %s1240_s28  ;;  %669 = vrot.lane.b32.xlu1 %v1150_v39, %s1238_s24  ;;  %v544_v31 = vrot.slane %v542_v18, 5  ;;  %v1163_v32 = vcombine.low %v1468_v40, %v606_v21  ;;  %v1164_v33 = vcombine.low %v610_v5, %v1503_v20  ;;  %v508_v35 = vrot.slane %v506_v23, 5 }
  0xb9   : > { %v495_v12 = vsel %vm1510_vm11, %v490_v24, %v494_v61  ;;  %v504_v13 = vrot.slane %v503_v11, 4  ;;  %v522_v37 = vrot.slane %v520_v25, 5  ;;  %v534_v39 = vshll.u32 %v1443_v43, 16 }
  0xba   : > { %v555_v45 = vrot.slane %v553_v48, 4  ;;  %v558_v46 = vrot.slane %v556_v27, 5  ;;  %v567_v47 = vshrl.u32 %v1448_v29, 16  ;;  %v570_v40 = vshll.u32 %v1448_v29, 16 }
  0xbb   : > { %v523_v49 = vsel %vm1510_vm11, %v518_v60, %v522_v37  ;;  %v532_v14 = vrot.slane %v531_v28, 4  ;;  %v545_v15 = vor.u32 %v544_v31, %v541_v9  ;;  %v1145_v50 = vcombine.low %v495_v12, %v495_v12 }
  0xbc   : > { %733 = vrot.lane.b32.xlu0 %v1151_v57, %s1240_s28  ;;  %707 = vrot.lane.b32.xlu1 %v1162_v4, %s1239_s25  ;;  %v509_v43 = vsel %vm1510_vm11, %v504_v13, %v508_v35  ;;  %v536_v51 = vrot.slane %v534_v39, 5  ;;  %v548_v53 = vshll.u32 %v1431_v22, 16  ;;  %v845_v54 = vsel %vm843_vm12, %v1226_v36, 0 }
  0xbd   : > { %v1146_v29 = vcombine.low %v509_v43, %v523_v49  ;;  %v559_v55 = vor.u32 %v558_v46, %v555_v45  ;;  %v569_v56 = vrot.slane %v567_v47, 4  ;;  %1189 = vmatpush3.bf16.msra.mxu0 %v845_v54  ;;  %1203 = vmatpush3.bf16.msra.mxu1 %v845_v54  ;;  %v546_v59 = vrot.slane %v545_v15, 4 }
  0xbe   : > { %v537_v58 = vsel %vm1510_vm11, %v532_v14, %v536_v51  ;;  %v617_v63 = vshrl.u32 %v1454_v34, 16  ;;  %v620_v0 = vshll.u32 %v1454_v34, 16  ;;  %v562_v22 = vshll.u32 %v1470_v41, 16 }
  0xbf   : > { %v1157_v1 = vcombine.low %v495_v12, %v509_v43  ;;  %v550_v2 = vrot.slane %v548_v53, 5  ;;  %v1158_v3 = vcombine.low %v523_v49, %v537_v58  ;;  %v560_v4 = vrot.slane %v559_v55, 4 }
  0xc0   : > { %671 = vrot.lane.b32.xlu0 %v1151_v57, %s1238_s24  ;;  %673 = vrot.lane.b32.xlu1 %v1506_v19, %s1238_s24  ;;  %v572_v57 = vrot.slane %v570_v40, 5  ;;  %v619_v7 = vrot.slane %v617_v63, 4  ;;  %v622_v8 = vrot.slane %v620_v0, 5  ;;  %v564_v16 = vrot.slane %v562_v22, 5 }
  0xc1   : > { %v551_v6 = vsel %vm1510_vm11, %v546_v59, %v550_v2  ;;  %v576_v34 = vshll.u32 %v1456_v30, 16  ;;  %v626_v24 = vshll.u32 %v1462_v38, 16  ;;  %v1166_v60 = vcombine.low %v1503_v20, %v1503_v20 }
  0xc2   : > { %v573_v5 = vor.u32 %v572_v57, %v569_v56  ;;  %v1147_v17 = vcombine.low %v537_v58, %v551_v6  ;;  %v565_v41 = vsel %vm1510_vm11, %v560_v4, %v564_v16  ;;  %v623_v21 = vor.u32 %v622_v8, %v619_v7 }
  0xc3   : > { %v578_v23 = vrot.slane %v576_v34, 5  ;;  %v1159_v44 = vcombine.low %v551_v6, %v565_v41  ;;  %v628_v61 = vrot.slane %v626_v24, 5  ;;  %vm805_vm4 = vcmask 261120  }
  0xc4   : > { %709 = vrot.lane.b32.xlu0 %v1163_v32, %s1239_s25  ;;  %711 = vrot.lane.b32.xlu1 %v1164_v33, %s1239_s25  ;;  %v574_v18 = vrot.slane %v573_v5, 4  ;;  %v624_v25 = vrot.slane %v623_v21, 4  ;;  %vm834_vm5 = vcmask 293888  }
  0xc6   : > { %v579_v11 = vsel %vm1510_vm11, %v574_v18, %v578_v23  ;;  %v629_v48 = vsel %vm1510_vm11, %v624_v25, %v628_v61 }
  0xc7   : > { %v1148_v30 = vcombine.low %v565_v41, %v579_v11  ;;  %v1160_v27 = vcombine.low %v579_v11, %v629_v48  ;;  %v1165_v38 = vcombine.low %v629_v48, %v629_v48 }
  0xc8   : > { %648 = vrot.lane.b32.xlu0 %v1145_v50, %s1241_s7  ;;  %650 = vrot.lane.b32.xlu1 %v1146_v29, %s1241_s7 }
  0xcc   : > { %692 = vrot.lane.b32.xlu0 %v1157_v1, %s1242_s8  ;;  %694 = vrot.lane.b32.xlu1 %v1158_v3, %s1242_s8 }
  0xd0   : > { %722 = vrot.lane.b32.xlu0 %v1146_v29, %s1243_s9  ;;  %724 = vrot.lane.b32.xlu1 %v1147_v17, %s1243_s9 }
  0xd4   : > { %696 = vrot.lane.b32.xlu0 %v1159_v44, %s1242_s8  ;;  %652 = vrot.lane.b32.xlu1 %v1147_v17, %s1241_s7 }
  0xd8   : > { %726 = vrot.lane.b32.xlu0 %v1148_v30, %s1243_s9  ;;  %654 = vrot.lane.b32.xlu1 %v1148_v30, %s1241_s7 }
  0xdc   : > { %735 = vrot.lane.b32.xlu0 %v1506_v19, %s1240_s28  ;;  %698 = vrot.lane.b32.xlu1 %v1160_v27, %s1242_s8 }
  0xe0   : > { %728 = vrot.lane.b32.xlu1 %v1165_v38, %s1243_s9 }
  0xe4   : > { %737 = vrot.lane.b32.xlu1 %v1166_v60, %s1240_s28 }
 0x10a   : > { %v680_v28 = vpop.permute.xlu0 %679 }
 0x10f   : > { %v714_v9 = vpop.permute.xlu0 %713 }
 0x112   : > { %v682_v31 = vpop.permute.xlu1 %681 }
 0x117   : > { %v716_v33 = vpop.permute.xlu1 %715 }
 0x11a   : > { %v684_v32 = vpop.permute.xlu0 %683 }
 0x11e   : > { %v718_v26 = vpop.permute.xlu0 %717 }
 0x122   : > { %v668_v35 = vpop.permute.xlu0 %667  ;;  %v686_v36 = vpop.permute.xlu1 %685 }
 0x126   : > { %v706_v12 = vpop.permute.xlu0 %705  ;;  %v1560_v13 = vpop.permute.xlu1 %719 }
 0x12a   : > { %v732_v19 = vpop.permute.xlu0 %731  ;;  %v670_v37 = vpop.permute.xlu1 %669 }
 0x12e   : > { %v734_v39 = vpop.permute.xlu0 %733  ;;  %v708_v45 = vpop.permute.xlu1 %707 }
 0x132   : > { %v672_v46 = vpop.permute.xlu0 %671  ;;  %v674_v47 = vpop.permute.xlu1 %673 }
 0x136   : > { %v710_v20 = vpop.permute.xlu0 %709  ;;  %v712_v40 = vpop.permute.xlu1 %711 }
 0x13a   : > { %v649_v49 = vpop.permute.xlu0 %648  ;;  %v651_v14 = vpop.permute.xlu1 %650 }
 0x13b   : > { %v741_v15 = vsel %vm739_vm13, %v1377_v42, %v649_v49  ;;  %v744_v50 = vsel %vm739_vm13, %v1359_v10, %v651_v14 }
 0x13c   : > { %v753_v43 = vsel %vm751_vm14, %v741_v15, %v668_v35  ;;  %v755_v51 = vsel %vm751_vm14, %v744_v50, %v670_v37 }
 0x13d   : > { %v762_v53 = vsel %vm760_vm15, %v753_v43, %v680_v28  ;;  %v764_v54 = vsel %vm760_vm15, %v755_v51, %v682_v31 }
 0x13e   : > { %v693_v29 = vpop.permute.xlu0 %692  ;;  %v695_v55 = vpop.permute.xlu1 %694 }
 0x13f   : > { %v771_v56 = vsel %vm769_vm0, %v762_v53, %v693_v29  ;;  %v773_v42 = vsel %vm769_vm0, %v764_v54, %v695_v55 }
 0x140   : > { %v780_v57 = vsel %vm778_vm1, %v771_v56, %v706_v12  ;;  %v782_v10 = vsel %vm778_vm1, %v773_v42, %v708_v45 }
 0x141   : > { %v789_v58 = vsel %vm787_vm2, %v780_v57, %v714_v9  ;;  %v791_v59 = vsel %vm787_vm2, %v782_v10, %v716_v33 }
 0x142   : > { %v723_v63 = vpop.permute.xlu0 %722  ;;  %v725_v0 = vpop.permute.xlu1 %724 }
 0x143   : > { %v798_v22 = vsel %vm796_vm3, %v789_v58, %v723_v63  ;;  %v800_v1 = vsel %vm796_vm3, %v791_v59, %v725_v0 }
 0x144   : > { %v807_v2 = vsel %vm805_vm4, %v798_v22, %v732_v19  ;;  %v809_v3 = vsel %vm805_vm4, %v800_v1, %v734_v39 }
 0x145   : > { %1190 = vmatprep.mubr.msk.bf16.mxu0 %vm834_vm5, %v807_v2 }
 0x146   : > { %1191 = vmatmul.mubr.msk.bf16.vlgmr.msra.gmra.mrb[0].mxu0 %vm834_vm5, %v809_v3  ;;  %v697_v4 = vpop.permute.xlu0 %696  ;;  %v653_v5 = vpop.permute.xlu1 %652 }
 0x147   : > { %v747_v6 = vsel %vm739_vm13, %v1387_v52, %v653_v5 }
 0x148   : > { %v757_v7 = vsel %vm751_vm14, %v747_v6, %v672_v46 }
 0x149   : > { %v766_v8 = vsel %vm760_vm15, %v757_v7, %v684_v32 }
 0x14a   : > { %v727_v16 = vpop.permute.xlu0 %726  ;;  %v775_v34 = vsel %vm769_vm0, %v766_v8, %v697_v4  ;;  %v655_v17 = vpop.permute.xlu1 %654 }
 0x14b   : > { %v784_v41 = vsel %vm778_vm1, %v775_v34, %v710_v20  ;;  %v750_v18 = vsel %vm739_vm13, %v1417_v62, %v655_v17 }
 0x14c   : > { %v759_v21 = vsel %vm751_vm14, %v750_v18, %v674_v47  ;;  %v793_v23 = vsel %vm787_vm2, %v784_v41, %v718_v26 }
 0x14d   : > { %v802_v44 = vsel %vm796_vm3, %v793_v23, %v727_v16  ;;  %v768_v52 = vsel %vm760_vm15, %v759_v21, %v686_v36 }
 0x14e   : > { %v736_v24 = vpop.permute.xlu0 %735  ;;  %v699_v11 = vpop.permute.xlu1 %698 }
 0x14f   : > { %v811_v25 = vsel %vm805_vm4, %v802_v44, %v736_v24  ;;  %v777_v30 = vsel %vm769_vm0, %v768_v52, %v699_v11 }
 0x150   : > { %1194 = vmatprep.mubr.msk.bf16.mxu1 %vm834_vm5, %v811_v25  ;;  %v786_v61 = vsel %vm778_vm1, %v777_v30, %v712_v40 }
 0x151   : > { %v795_v62 = vsel %vm787_vm2, %v786_v61, %v1560_v13 }
 0x152   : > { %v729_v48 = vpop.permute.xlu1 %728 }
 0x153   : > { %v804_v27 = vsel %vm796_vm3, %v795_v62, %v729_v48 }
 0x156   : > { %v738_v38 = vpop.permute.xlu1 %737 }
 0x157   : > { %v813_v60 = vsel %vm805_vm4, %v804_v27, %v738_v38 }
 0x158   : > { %1195 = vmatmul.mubr.msk.bf16.vlgmr.msra.gmra.mrb[0].mxu1 %vm834_vm5, %v813_v60 }
 0x219   : > { %v1192_v28 = vpop.f32.mrb[0].mxu0 }
 0x21a   : > { %v881_v9 = vpop.f32.mrb[1].mxu0  ;;  %v937_v33 = vmul.f32 %v1192_v28, %v1192_v28  ;;  %v915_v19 = vsel %vm751_vm14, %v1192_v28, 0.0 }
 0x21b   : > { %v935_v31 = vmul.f32 %v881_v9, %v881_v9  ;;  %965 = vxpose.xlu0.b32.start [1/8] (short) (narrow) %v881_v9, 8  ;;  %v1193_v32 = vpop.f32.mrb[2].mxu0  ;;  %v912_v35 = vsel %vm751_vm14, %v881_v9, 0.0 }
 0x21c   : > { %v884_v26 = vpop.f32.mrb[3].mxu0  ;;  %v938_v39 = vmul.f32 %v1193_v32, %v1193_v32  ;;  %v946_v20 = vsel %vm751_vm14, %v937_v33, 0.0  ;;  %v917_v40 = vsel %vm751_vm14, %v1193_v32, 0.0 }
 0x21d   : > { %v913_v36 = vsel %vm751_vm14, %v884_v26, 0.0  ;;  %v936_v12 = vmul.f32 %v884_v26, %v884_v26  ;;  %v943_v37 = vsel %vm751_vm14, %v935_v31, 0.0 }
 0x21e   : > { %v914_v13 = vadd.f32 %v913_v36, %v912_v35  ;;  %v948_v15 = vsel %vm751_vm14, %v938_v39, 0.0 }
 0x21f   : > { %v944_v45 = vsel %vm751_vm14, %v936_v12, 0.0  ;;  %966 = vxpose.xlu0.b32.cont [2/8] (short) (narrow) %v884_v26, 8 }
 0x220   : > { %v916_v46 = vadd.f32 %v915_v19, %v914_v13  ;;  %v945_v47 = vadd.f32 %v944_v45, %v943_v37 }
 0x222   : > { %v947_v49 = vadd.f32 %v946_v20, %v945_v47  ;;  %v918_v14 = vadd.f32 %v917_v40, %v916_v46 }
 0x223   : > { %967 = vxpose.xlu0.b32.cont [3/8] (short) (narrow) %v1192_v28, 8 }
 0x224   : > { %v949_v50 = vadd.f32 %v948_v15, %v947_v49 }
 0x227   : > { %968 = vxpose.xlu0.b32.cont [4/8] (short) (narrow) %v1193_v32, 8 }
 0x22b   : > { %v1196_v43 = vpop.f32.mrb[0].mxu1 }
 0x22c   : > { %v897_v51 = vpop.f32.mrb[1].mxu1  ;;  %v941_v42 = vmul.f32 %v1196_v43, %v1196_v43  ;;  %v923_v0 = vsel %vm751_vm14, %v1196_v43, 0.0 }
 0x22d   : > { %v919_v53 = vsel %vm751_vm14, %v897_v51, 0.0  ;;  %v939_v54 = vmul.f32 %v897_v51, %v897_v51  ;;  %969 = vxpose.xlu0.b32.cont [5/8] (short) (narrow) %v897_v51, 8  ;;  %v1197_v29 = vpop.f32.mrb[2].mxu1 }
 0x22e   : > { %v920_v55 = vadd.f32 %v919_v53, %v918_v14  ;;  %v900_v56 = vpop.f32.mrb[3].mxu1  ;;  %v942_v22 = vmul.f32 %v1197_v29, %v1197_v29  ;;  %v954_v4 = vsel %vm751_vm14, %v941_v42, 0.0  ;;  %v925_v5 = vsel %vm751_vm14, %v1197_v29, 0.0 }
 0x22f   : > { %v950_v57 = vsel %vm751_vm14, %v939_v54, 0.0  ;;  %v921_v10 = vsel %vm751_vm14, %v900_v56, 0.0  ;;  %v940_v58 = vmul.f32 %v900_v56, %v900_v56 }
 0x230   : > { %v951_v59 = vadd.f32 %v950_v57, %v949_v50  ;;  %v922_v63 = vadd.f32 %v921_v10, %v920_v55  ;;  %v956_v8 = vsel %vm751_vm14, %v942_v22, 0.0 }
 0x231   : > { %v952_v1 = vsel %vm751_vm14, %v940_v58, 0.0  ;;  %970 = vxpose.xlu0.b32.cont [6/8] (short) (narrow) %v900_v56, 8 }
 0x232   : > { %v924_v2 = vadd.f32 %v923_v0, %v922_v63  ;;  %v953_v3 = vadd.f32 %v952_v1, %v951_v59 }
 0x234   : > { %v926_v6 = vadd.f32 %v925_v5, %v924_v2  ;;  %v955_v7 = vadd.f32 %v954_v4, %v953_v3 }
 0x235   : > { %971 = vxpose.xlu0.b32.cont [7/8] (short) (narrow) %v1196_v43, 8 }
 0x236   : > { %v927_v16 = vrot.slane %v926_v6, 4  ;;  %v957_v34 = vadd.f32 %v956_v8, %v955_v7 }
 0x238   : > { %v928_v17 = vadd.f32 %v927_v16, %v926_v6  ;;  %v958_v41 = vrot.slane %v957_v34, 4 }
 0x239   : > { %972 = vxpose.xlu0.b32.end [8/8] (short) (narrow) %v1197_v29, 8 }
 0x23a   : > { %v929_v18 = vrot.slane %v928_v17, 2  ;;  %v959_v21 = vadd.f32 %v958_v41, %v957_v34 }
 0x23c   : > { %v930_v23 = vadd.f32 %v929_v18, %v928_v17  ;;  %v960_v44 = vrot.slane %v959_v21, 2 }
 0x23e   : > { %v931_v52 = vrot.slane %v930_v23, 1  ;;  %v961_v24 = vadd.f32 %v960_v44, %v959_v21 }
 0x240   : > { %v932_v11 = vadd.f32 %v931_v52, %v930_v23  ;;  %v962_v25 = vrot.slane %v961_v24, 1 }
 0x242   : > { %934 = vst.msk [vmem:[%s209_s12] sm:$0x1] %vm933_vm6, %v932_v11  ;;  %v963_v30 = vadd.f32 %v962_v25, %v961_v24 }
 0x244   : > { %964 = vst.msk [vmem:[%s212_s17] sm:$0x1] %vm933_vm6, %v963_v30 }
 0x29d   : > { %v981_v61 = vpop.trf.xlu0 }
 0x29e   : > { %998 = vst.msk [vmem:[%s206_s21] sm:$0xff] %vm997_vm7, %v981_v61 }
 0x29f PF: > { %s15_s15 = sadd.s32 1, %s1233_s15  }
 0x2a0   : > { %p12_p4 = scmp.ge.s32.totalorder %s15_s15, 4  }
 0x2a2   :  { %14 = sbr.rel (!%p12_p4) target bundleno = 1 (0x1), region = 82 }

</bundles_post_ra>
